<compile_context>
chip_gen: v7x
topology: tpu7x:2x2x1
jax: 0.10.0
libtpu: 0.0.40
codegen_flags: <defaults>
</compile_context>

<pallas_src>
import math

import jax
import jax.numpy as jnp
from jax.experimental import pallas as pl
from jax.experimental.pallas import tpu as pltpu

HIDDEN = 64      # fc1 out
V_OUT = 1        # fc2 out ("vvalue")

_TILE_N_DEFAULT = 1024                 # rows per grid step (multiple of 8)
_TILE_BYTE_BUDGET = 2 * 1024 * 1024    # per x-tile buffer (x2 for double buffering)


def _round_up(x, m):
    return (x + m - 1) // m * m


def _centralv_kernel(x_ref, w1_ref, b1_ref, w2_ref, b2_ref, out_ref):
    """One N-tile of fc2(relu(fc1(x))).

    x_ref  : (TILE_N, D)    activation rows (native dtype, cast in-kernel)
    w1_ref : (64, D)        fc1 weight, PyTorch [out, in] layout   (resident)
    b1_ref : (64, 1)        fc1 bias as a column                   (resident)
    w2_ref : (64, 1)        fc2 weight transposed                  (resident)
    b2_ref : (1,)           fc2 bias (SMEM scalar)
    out_ref: (1, 1, TILE_N) lane-dense value row for this tile
    """
    x = x_ref[...].astype(w1_ref.dtype)
    # fc1 in transposed orientation: (64, D) . (TILE_N, D)^T -> (64, TILE_N) on the MXU.
    h = jax.lax.dot_general(
        w1_ref[...], x,
        dimension_numbers=(((1,), (1,)), ((), ())),
        preferred_element_type=jnp.float32,
    )
    h = jnp.maximum(h + b1_ref[...], 0.0)                          # bias + relu (VPU)
    # fc2 (output width 1): VPU multiply + sublane reduction instead of a
    # width-1 MXU matmul; result is a lane-dense (1, TILE_N) row.
    v = jnp.sum(h * w2_ref[...].astype(jnp.float32), axis=0, keepdims=True)
    v = v + b2_ref[0]
    out_ref[...] = v.reshape(out_ref.shape).astype(out_ref.dtype)


def centralv_value_flat(x_flat, w1, b1_col, w2_col, b2, *, tile_n_max=_TILE_N_DEFAULT):
    """x_flat: [N, D] -> [N, 1] float32 via a fused, N-tiled Pallas kernel."""
    n, d = x_flat.shape

    # Pick the biggest row-tile that fits the per-buffer VMEM budget (multiple of 8).
    bytes_per_row = d * x_flat.dtype.itemsize
    tile_cap = max(8, (_TILE_BYTE_BUDGET // max(1, bytes_per_row)) // 8 * 8)
    tile_n = int(min(tile_n_max, tile_cap, _round_up(n, 8)))
    tile_n = max(8, (tile_n // 8) * 8)

    n_pad = _round_up(n, tile_n)
    if n_pad != n:
        x_flat = jnp.pad(x_flat, ((0, n_pad - n), (0, 0)))   # zero tail rows, sliced off below
    num_tiles = n_pad // tile_n

    out = pl.pallas_call(
        _centralv_kernel,
        out_shape=jax.ShapeDtypeStruct((num_tiles, 1, tile_n), jnp.float32),
        grid=(num_tiles,),
        in_specs=[
            pl.BlockSpec((tile_n, d), lambda i: (i, 0)),           # x: streamed per tile
            pl.BlockSpec((HIDDEN, d), lambda i: (0, 0)),           # w1: resident
            pl.BlockSpec((HIDDEN, 1), lambda i: (0, 0)),           # b1: resident
            pl.BlockSpec((HIDDEN, V_OUT), lambda i: (0, 0)),       # w2^T: resident
            pl.BlockSpec(memory_space=pltpu.MemorySpace.SMEM),     # b2 scalar
        ],
        out_specs=pl.BlockSpec((1, 1, tile_n), lambda i: (i, 0, 0)),
        compiler_params=pltpu.CompilerParams(
            dimension_semantics=("parallel",),      # shard row tiles across TCs (v7x megacore)
            vmem_limit_bytes=32 * 1024 * 1024,
        ),
    )(x_flat, w1, b1_col, w2_col, b2)

    return out.reshape(-1)[:n].reshape(n, V_OUT)


def make_centralv_params(key, in_dim):
    """Deterministic init mimicking torch.nn.Linear (U(-1/sqrt(fan_in), +))."""
    k1, k2, k3, k4 = jax.random.split(key, 4)
    lim1 = 1.0 / math.sqrt(in_dim)
    lim2 = 1.0 / math.sqrt(HIDDEN)
    w1 = jax.random.uniform(k1, (HIDDEN, in_dim), jnp.float32, -lim1, lim1)  # fc1.weight [out,in]
    b1 = jax.random.uniform(k2, (HIDDEN, 1), jnp.float32, -lim1, lim1)       # fc1.bias (column)
    w2 = jax.random.uniform(k3, (HIDDEN, V_OUT), jnp.float32, -lim2, lim2)   # fc2.weight^T
    b2 = jax.random.uniform(k4, (V_OUT,), jnp.float32, -lim2, lim2)          # fc2.bias
    return w1, b1, w2, b2


def centralv_critic_forward(inputs, tformat, params, *, tile_n_max=_TILE_N_DEFAULT):
    """
    CentralVCritic.forward equivalent (non-recurrent).
    inputs: {'vfunction': array [a, bs, t, v]}   (tformat 'a*bs*t*v')
    returns ({'vvalue': array [a, bs, t, 1]}, tformat)
    """
    x = inputs["vfunction"]
    lead = x.shape[:-1]
    d = x.shape[-1]
    x_flat = x.reshape((-1, d))                       # _to_batch (no wrapper-side dtype cast)
    w1, b1, w2, b2 = params
    v_flat = centralv_value_flat(x_flat, w1, b1, w2, b2, tile_n_max=tile_n_max)
    return {"vvalue": v_flat.reshape(lead + (V_OUT,))}, tformat   # _from_batch


if __name__ == "__main__":
    key = jax.random.PRNGKey(0)
    k_in, k_p, k_in2 = jax.random.split(key, 3)

    def reference(x, params):
        w1, b1, w2, b2 = params
        d = x.shape[-1]
        xf = x.reshape(-1, d).astype(jnp.float32)
        h = jnp.maximum(xf @ w1.T + b1[:, 0][None, :], 0.0)
        v = jnp.sum(h * w2[:, 0][None, :], axis=-1, keepdims=True) + b2[0]
        return v.reshape(x.shape[:-1] + (V_OUT,))

    # Case 1: tiny shapes following the module's tformat "a*bs*t*v" (single tile).
    n_agents, bs, t_len, in_dim = 2, 3, 4, 32
    params = make_centralv_params(k_p, in_dim)
    x = jax.random.normal(k_in, (n_agents, bs, t_len, in_dim), jnp.float32)
    out, out_tformat = centralv_critic_forward({"vfunction": x}, "a*bs*t*v", params)
    v1 = jax.block_until_ready(out["vvalue"])
    assert v1.shape == (n_agents, bs, t_len, V_OUT)
    assert jnp.allclose(v1, reference(x, params), atol=2e-3, rtol=2e-3)

    # Case 2: larger N to exercise the multi-tile grid + tail-padding path (3 tiles of 512).
    n_agents2, bs2, t_len2 = 3, 8, 61        # N = 1464 -> padded to 1536
    x2 = jax.random.normal(k_in2, (n_agents2, bs2, t_len2, in_dim), jnp.float32)
    out2, _ = centralv_critic_forward({"vfunction": x2}, "a*bs*t*v", params, tile_n_max=512)
    v2 = jax.block_until_ready(out2["vvalue"])
    assert v2.shape == (n_agents2, bs2, t_len2, V_OUT)
    assert jnp.allclose(v2, reference(x2, params), atol=2e-3, rtol=2e-3)

    print("KERNEL_OK")
</pallas_src>

<mosaic_0001>
module attributes {stable_mosaic.version = 11 : i64} {
  func.func @_centralv_kernel(%arg0: i32, %arg1: memref<24x32xf32, #tpu.memory_space<vmem>>, %arg2: memref<64x32xf32, #tpu.memory_space<vmem>>, %arg3: memref<64x1xf32, #tpu.memory_space<vmem>>, %arg4: memref<64x1xf32, #tpu.memory_space<vmem>>, %arg5: memref<1xf32, #tpu.memory_space<smem>>, %arg6: memref<1x1x24xf32, #tpu.memory_space<vmem>>) attributes {dimension_semantics = [#tpu.dimension_semantics<parallel>], iteration_bounds = array<i64: 1>, scalar_prefetch = 0 : i64, scratch_operands = 0 : i64, tpu.core_type = #tpu.core_type<tc>, window_params = [{transform_indices = @transform_0, window_bounds = array<i64: 24, 32>}, {pipeline_mode = #tpu.pipeline_mode<synchronous>, transform_indices = @transform_1, window_bounds = array<i64: 64, 32>}, {pipeline_mode = #tpu.pipeline_mode<synchronous>, transform_indices = @transform_2, window_bounds = array<i64: 64, 1>}, {pipeline_mode = #tpu.pipeline_mode<synchronous>, transform_indices = @transform_3, window_bounds = array<i64: 64, 1>}, {transform_indices = @transform_4, window_bounds = array<i64: 1>}, {transform_indices = @transform_5, window_bounds = array<i64: 1, 1, 24>}]} {
    %c0 = arith.constant 0 : index
    %c0_0 = arith.constant 0 : index
    %0 = vector.load %arg1[%c0, %c0_0] : memref<24x32xf32, #tpu.memory_space<vmem>>, vector<24x32xf32>
    %c0_1 = arith.constant 0 : index
    %c0_2 = arith.constant 0 : index
    %1 = vector.load %arg2[%c0_1, %c0_2] : memref<64x32xf32, #tpu.memory_space<vmem>>, vector<64x32xf32>
    %cst = arith.constant dense<0.000000e+00> : vector<64x24xf32>
    %2 = tpu.matmul %1, %0, %cst {dimension_numbers = #tpu.dot_dimension_numbers<[1], [1], [0], [0], [0, 0, 1, 0], [], []>} : vector<64x32xf32>, vector<24x32xf32>, vector<64x24xf32> -> vector<64x24xf32>
    %c0_3 = arith.constant 0 : index
    %c0_4 = arith.constant 0 : index
    %3 = vector.load %arg3[%c0_3, %c0_4] : memref<64x1xf32, #tpu.memory_space<vmem>>, vector<64x1xf32>
    %4 = vector.broadcast %3 : vector<64x1xf32> to vector<64x24xf32>
    %5 = arith.addf %2, %4 : vector<64x24xf32>
    %cst_5 = arith.constant 0.000000e+00 : f32
    %6 = vector.broadcast %cst_5 : f32 to vector<64x24xf32>
    %7 = arith.maximumf %5, %6 : vector<64x24xf32>
    %c0_6 = arith.constant 0 : index
    %c0_7 = arith.constant 0 : index
    %8 = vector.load %arg4[%c0_6, %c0_7] : memref<64x1xf32, #tpu.memory_space<vmem>>, vector<64x1xf32>
    %9 = vector.broadcast %8 : vector<64x1xf32> to vector<64x24xf32>
    %10 = arith.mulf %7, %9 : vector<64x24xf32>
    %cst_8 = arith.constant dense<0.000000e+00> : vector<24xf32>
    %11 = vector.multi_reduction <add>, %10, %cst_8 [0] : vector<64x24xf32> to vector<24xf32>
    %12 = vector.shape_cast %11 : vector<24xf32> to vector<1x24xf32>
    %c0_9 = arith.constant 0 : index
    %13 = memref.load %arg5[%c0_9] : memref<1xf32, #tpu.memory_space<smem>>
    %14 = vector.broadcast %13 : f32 to vector<1x24xf32>
    %15 = arith.addf %12, %14 : vector<1x24xf32>
    %16 = vector.shape_cast %15 : vector<1x24xf32> to vector<1x1x24xf32>
    %c0_10 = arith.constant 0 : index
    %c0_11 = arith.constant 0 : index
    %c0_12 = arith.constant 0 : index
    %17 = vector.load %arg6[%c0_10, %c0_11, %c0_12] : memref<1x1x24xf32, #tpu.memory_space<vmem>>, vector<1x1x24xf32>
    tpu.vector_store %arg6[%c0_10, %c0_11, %c0_12], %16 {strides = array<i32>} : memref<1x1x24xf32, #tpu.memory_space<vmem>>, vector<1x1x24xf32>,
    return
  }
  func.func @transform_0(%arg0: i32) -> (i32, i32) {
    %c0_i32 = arith.constant 0 : i32
    %c0_i32_0 = arith.constant 0 : i32
    return %arg0, %c0_i32 : i32, i32
  }
  func.func @transform_1(%arg0: i32) -> (i32, i32) {
    %c0_i32 = arith.constant 0 : i32
    %c0_i32_0 = arith.constant 0 : i32
    %c0_i32_1 = arith.constant 0 : i32
    return %c0_i32, %c0_i32_0 : i32, i32
  }
  func.func @transform_2(%arg0: i32) -> (i32, i32) {
    %c0_i32 = arith.constant 0 : i32
    %c0_i32_0 = arith.constant 0 : i32
    %c0_i32_1 = arith.constant 0 : i32
    return %c0_i32, %c0_i32_0 : i32, i32
  }
  func.func @transform_3(%arg0: i32) -> (i32, i32) {
    %c0_i32 = arith.constant 0 : i32
    %c0_i32_0 = arith.constant 0 : i32
    %c0_i32_1 = arith.constant 0 : i32
    return %c0_i32, %c0_i32_0 : i32, i32
  }
  func.func @transform_4(%arg0: i32) -> i32 {
    %c0_i32 = arith.constant 0 : i32
    %c0_i32_0 = arith.constant 0 : i32
    return %c0_i32 : i32
  }
  func.func @transform_5(%arg0: i32) -> (i32, i32, i32) {
    %c0_i32 = arith.constant 0 : i32
    %c0_i32_0 = arith.constant 0 : i32
    %c0_i32_1 = arith.constant 0 : i32
    return %arg0, %c0_i32, %c0_i32_0 : i32, i32, i32
  }
}

</mosaic_0001>

<bundles_post_ra>
// kernel: tpu_custom_call.1
= control target key start
LH: loop header
LB: loop body
LE: loop exit
PB: predicated region body
PF: predicated region fallthrough
CT: control target
= control target key end

     0   :  { %vm81_vm0 = vcmask 261120   ;;  %v403_v5 = vmov 0   ;;  %s553_s0 = inlined_call_operand.vmem [shape: f32[24,32], index: 0, kind: input, shape index: {}]   ;;  %s554_s1 = inlined_call_operand.vmem [shape: f32[64,32], index: 1, kind: input, shape index: {}]   ;;  %s555_s2 = inlined_call_operand.vmem [shape: f32[64,1], index: 2, kind: input, shape index: {}]   ;;  %s556_s3 = inlined_call_operand.vmem [shape: f32[64,1], index: 3, kind: input, shape index: {}]   ;;  %s557_s4 = inlined_call_operand.<no memory space> [shape: f32[1], index: 4, kind: input, shape index: {}]   ;;  %s558_s5 = inlined_call_operand.hbm [shape: f32[1,1,24], index: 5, kind: output, shape index: {}]  }
   0x1   :  { %v22_v0 = vld [vmem:[%s553_s0] sm:$0xff]  ;;  %v23_v1 = vld [vmem:[%s553_s0 + $0x8] sm:$0xff]  ;;  %vm366_vm1 = vmpackc.low %vm81_vm0, %vm81_vm0  ;;  %377 = vset.pattern.permute.xlu0 %v403_v5  ;;  %378 = vset.pattern.permute.xlu1 %v403_v5 }
   0x2   :  { %v365_v2 = vpack.c.bf16 %v23_v1, %v22_v0  ;;  %v25_v3 = vld [vmem:[%s554_s1] sm:$0xff]  ;;  %v24_v6 = vld [vmem:[%s553_s0 + $0x10] sm:$0xff]  ;;  %v34_v9 = vld [vmem:[%s555_s2 + $0x8] sm:$0xff] }
   0x3   :  { %v29_v4 = vld [vmem:[%s554_s1 + $0x20] sm:$0xff]  ;;  %353 = vmatprep.mubr.msk.f32.mxu0 %vm81_vm0, %v25_v3  ;;  %v35_v8 = vld [vmem:[%s555_s2 + $0x10] sm:$0xff]  ;;  %v36_v10 = vld [vmem:[%s555_s2 + $0x18] sm:$0xff] }
   0x4   :  { %359 = vmatprep.mubr.msk.f32.mxu1 %vm81_vm0, %v29_v4  ;;  %367 = vmatprep.subr.msk.bf16.mxu0 %vm366_vm1, %v365_v2  ;;  %v33_v7 = vld [vmem:[%s555_s2] sm:$0xff] }
   0x5   :  { %371 = vmatprep.subr.msk.bf16.mxu1 %vm366_vm1, %v365_v2  ;;  %370 = vmatpush3.bf16.xpose.msk.msra.mxu0 %vm366_vm1, %v365_v2 }
   0x6   :  { %373 = vmatpush3.bf16.xpose.msk.msra.mxu1 %vm366_vm1, %v365_v2  ;;  %351 = vmatprep.subr.msk.mxu0 %vm81_vm0, %v24_v6 }
   0x7   :  { %372 = vmatprep.subr.msk.mxu1 %vm81_vm0, %v24_v6  ;;  %43 = vperm.xlu0 %377, %v33_v7  }
   0x8   :  { %53 = vperm.xlu1 %378, %v35_v8  }
   0x9   :  { %11 = vsyncpa [#allocation4], 0  ;;  %v228_v11 = vld [vmem:[%s556_s3] sm:$0xff]  ;;  %v229_v12 = vld [vmem:[%s556_s3 + $0x8] sm:$0xff]  ;;  %vm284_vm2 = vcmask 195584   ;;  %s404_s19 = smov [#allocation3]  }
   0xa   :  { %v26_v13 = vld [vmem:[%s554_s1 + $0x8] sm:$0xff]  ;;  %v27_v15 = vld [vmem:[%s554_s1 + $0x10] sm:$0xff]  ;;  %v37_v17 = vld [vmem:[%s555_s2 + $0x20] sm:$0xff]  ;;  %s317_s20 = sshll.u32 %s404_s19, 4  ;;  %vm309_vm3 = vcmask 188416   ;;  %s318_s20 = int_to_ptr.vmem [resolvable:$true] %s317_s20 }
   0xb   :  { %48 = vperm.xlu0 %377, %v34_v9   ;;  %v30_v14 = vld [vmem:[%s554_s1 + $0x28] sm:$0xff]  ;;  %v31_v16 = vld [vmem:[%s554_s1 + $0x30] sm:$0xff]  ;;  %v28_v19 = vld [vmem:[%s554_s1 + $0x18] sm:$0xff]  ;;  %s379_s21 = scalar_lea.vmem %s318_s20, 16  ;;  %s383_s22 = scalar_lea.vmem %s318_s20, 32 }
   0xc   :  { %58 = vperm.xlu1 %378, %v36_v10   ;;  %v230_v18 = vld [vmem:[%s556_s3 + $0x10] sm:$0xff]  ;;  %v32_v20 = vld [vmem:[%s554_s1 + $0x38] sm:$0xff]  ;;  %v38_v21 = vld [vmem:[%s555_s2 + $0x28] sm:$0xff]  ;;  %p380_p0 = scmp.ne.s32.totalorder %s318_s20, %s379_s21  ;;  %p384_p1 = scmp.lt.s32.totalorder %s318_s20, %s318_s20 }
   0xd   :  { %352 = vmatpush3.xpose.msk.msra.mxu0 %vm81_vm0, %v24_v6  ;;  %v231_v22 = vld [vmem:[%s556_s3 + $0x18] sm:$0xff]  ;;  %v39_v23 = vld [vmem:[%s555_s2 + $0x30] sm:$0xff]  ;;  %v232_v24 = vld [vmem:[%s556_s3 + $0x20] sm:$0xff]  ;;  %p385_p2 = scmp.lt.s32.totalorder %s383_s22, %s379_s21 }
   0xe   :  { %374 = vmatpush3.xpose.msk.msra.mxu1 %vm81_vm0, %v24_v6  ;;  %v40_v25 = vld [vmem:[%s555_s2 + $0x38] sm:$0xff]  ;;  %v233_v26 = vld [vmem:[%s556_s3 + $0x28] sm:$0xff]  ;;  %v234_v27 = vld [vmem:[%s556_s3 + $0x30] sm:$0xff] }
   0xf   :  { %238 = vperm.xlu0 %377, %v228_v11   ;;  %v235_v28 = vld [vmem:[%s556_s3 + $0x38] sm:$0xff]  ;;  %p386_p3 = por %p385_p2, %p384_p1 }
  0x10   :  { %243 = vperm.xlu1 %378, %v229_v12   ;;  %354 = vmatmul.mubr.msk.f32.vlgmr.msra.gmra.mrb[0].mxu0 %vm81_vm0, %v26_v13 }
  0x11   :  { %360 = vmatmul.mubr.msk.f32.vlgmr.msra.gmra.mrb[0].mxu1 %vm81_vm0, %v30_v14  ;;  %356 = vmatprep.mubr.msk.f32.mxu0 %vm81_vm0, %v27_v15  ;;  %p387_p4 = pnand %p386_p3, %p380_p0 }
  0x12   :  { %362 = vmatprep.mubr.msk.f32.mxu1 %vm81_vm0, %v31_v16 }
  0x13   :  { %63 = vperm.xlu0 %377, %v37_v17  }
  0x14   :  { %248 = vperm.xlu1 %378, %v230_v18   ;;  %357 = vmatmul.mubr.msk.f32.gmra.mrb[2].mxu0 %vm81_vm0, %v28_v19 }
  0x15   :  { %363 = vmatmul.mubr.msk.f32.gmra.mrb[2].mxu1 %vm81_vm0, %v32_v20 }
  0x17   :  { %68 = vperm.xlu0 %377, %v38_v21  }
  0x18   :  { %253 = vperm.xlu1 %378, %v231_v22  }
  0x1b   :  { %73 = vperm.xlu0 %377, %v39_v23  }
  0x1c   :  { %258 = vperm.xlu1 %378, %v232_v24  }
  0x1f   :  { %78 = vperm.xlu0 %377, %v40_v25  }
  0x20   :  { %263 = vperm.xlu1 %378, %v233_v26  }
  0x23   :  { %268 = vperm.xlu0 %377, %v234_v27  }
  0x24   :  { %273 = vperm.xlu1 %378, %v235_v28  }
  0x86   :  { %v44_v29 = vpop.permute.xlu0 %43 }
  0x87   :  { %v54_v30 = vpop.permute.xlu1 %53 }
  0x8a   :  { %v49_v31 = vpop.permute.xlu0 %48 }
  0x8b   :  { %v59_v32 = vpop.permute.xlu1 %58 }
  0x8e   :  { %v239_v33 = vpop.permute.xlu0 %238 }
  0x8f   :  { %v244_v34 = vpop.permute.xlu1 %243 }
  0x92   :  { %v64_v35 = vpop.permute.xlu0 %63 }
  0x93   :  { %v249_v36 = vpop.permute.xlu1 %248 }
  0x96   :  { %v69_v37 = vpop.permute.xlu0 %68 }
  0x97   :  { %v254_v38 = vpop.permute.xlu1 %253 }
  0x9a   :  { %v74_v45 = vpop.permute.xlu0 %73 }
  0x9b   :  { %v259_v46 = vpop.permute.xlu1 %258 }
  0x9e   :  { %v79_v1 = vpop.permute.xlu0 %78 }
  0x9f   :  { %v264_v7 = vpop.permute.xlu1 %263 }
  0xa2   :  { %v269_v15 = vpop.permute.xlu0 %268 }
  0xa3   :  { %v274_v19 = vpop.permute.xlu1 %273 }
  0xe3   :  { %v355_v39 = vpop.f32.mrb[0].mxu0 }
  0xe4   :  { %v361_v40 = vpop.f32.mrb[0].mxu1  ;;  %v187_v41 = vadd.f32 %v355_v39, %v49_v31  ;;  %v181_v42 = vpop.f32.mrb[1].mxu0 }
  0xe5   :  { %v201_v43 = vpop.f32.mrb[1].mxu1  ;;  %v182_v44 = vadd.f32 %v181_v42, %v44_v29  ;;  %v207_v56 = vadd.f32 %v361_v40, %v69_v37 }
  0xe6   :  { %v221_v47 = vmax.f32 %v187_v41, 0.0  ;;  %v202_v49 = vadd.f32 %v201_v43, %v64_v35 }
  0xe7   :  { %v220_v48 = vmax.f32 %v182_v44, 0.0  ;;  %v358_v50 = vpop.f32.mrb[2].mxu0  ;;  %v225_v3 = vmax.f32 %v207_v56, 0.0 }
  0xe8   :  { %v364_v51 = vpop.f32.mrb[2].mxu1  ;;  %v277_v52 = vmul.f32 %v244_v34, %v221_v47  ;;  %v197_v53 = vadd.f32 %v358_v50, %v59_v32  ;;  %v191_v54 = vpop.f32.mrb[3].mxu0  ;;  %v224_v62 = vmax.f32 %v202_v49, 0.0 }
  0xe9   :  { %v211_v55 = vpop.f32.mrb[3].mxu1  ;;  %v276_v57 = vmul.f32 %v239_v33, %v220_v48  ;;  %v192_v58 = vadd.f32 %v191_v54, %v54_v30  ;;  %v217_v5 = vadd.f32 %v364_v51, %v79_v1  ;;  %v281_v12 = vmul.f32 %v264_v7, %v225_v3 }
  0xea   :  { %v286_v59 = vsel %vm284_vm2, %v277_v52, 0.0  ;;  %v223_v60 = vmax.f32 %v197_v53, 0.0  ;;  %v212_v0 = vadd.f32 %v211_v55, %v74_v45  ;;  %v280_v8 = vmul.f32 %v259_v46, %v224_v62 }
  0xeb   :  { %v285_v61 = vsel %vm284_vm2, %v276_v57, 0.0  ;;  %v222_v63 = vmax.f32 %v192_v58, 0.0  ;;  %v227_v14 = vmax.f32 %v217_v5, 0.0  ;;  %v294_v21 = vsel %vm284_vm2, %v281_v12, 0.0 }
  0xec   :  { %v287_v2 = vadd.f32 %v286_v59, %v285_v61  ;;  %v279_v4 = vmul.f32 %v254_v38, %v223_v60  ;;  %v226_v10 = vmax.f32 %v212_v0, 0.0  ;;  %v292_v17 = vsel %vm284_vm2, %v280_v8, 0.0 }
  0xed   :  { %v278_v6 = vmul.f32 %v249_v36, %v222_v63  ;;  %v283_v22 = vmul.f32 %v274_v19, %v227_v14  ;;  %v307_v33 = vstv %s557_s4 }
  0xee   :  { %v290_v13 = vsel %vm284_vm2, %v279_v4, 0.0  ;;  %v282_v18 = vmul.f32 %v269_v15, %v226_v10 }
  0xef   :  { %v288_v9 = vsel %vm284_vm2, %v278_v6, 0.0  ;;  %v298_v26 = vsel %vm284_vm2, %v283_v22, 0.0 }
  0xf0   :  { %v289_v11 = vadd.f32 %v288_v9, %v287_v2  ;;  %v296_v24 = vsel %vm284_vm2, %v282_v18, 0.0 }
  0xf2   :  { %v291_v16 = vadd.f32 %v290_v13, %v289_v11 }
  0xf4   :  { %v293_v20 = vadd.f32 %v292_v17, %v291_v16 }
  0xf6   :  { %v295_v23 = vadd.f32 %v294_v21, %v293_v20 }
  0xf8   :  { %v297_v25 = vadd.f32 %v296_v24, %v295_v23 }
  0xfa   :  { %v299_v27 = vadd.f32 %v298_v26, %v297_v25 }
  0xfc   :  { %v300_v28 = vrot.slane %v299_v27, 4 }
  0xfe   :  { %v301_v29 = vadd.f32 %v300_v28, %v299_v27 }
 0x100   :  { %v302_v30 = vrot.slane %v301_v29, 2 }
 0x102   :  { %v303_v31 = vadd.f32 %v302_v30, %v301_v29 }
 0x104   :  { %v304_v32 = vrot.slane %v303_v31, 1 }
 0x106   :  { %v305_v34 = vadd.f32 %v304_v32, %v303_v31 }
 0x108   :  { %v308_v35 = vadd.f32 %v307_v33, %v305_v34 }
 0x10a   :  { %310 = vst.msk [vmem:[#allocation3] sm:$0x1] %vm309_vm3, %v308_v35 }
 0x10b   :  { %390 = shalt.err (!%p387_p4)
}
 0x10c   :  { %s391_s25 = scalar_lea.hbm %s558_s5, 16 }
 0x10d   :  { %p392_p5 = scmp.ne.s32.totalorder %s558_s5, %s391_s25  ;;  %p395_p6 = scmp.lt.u32.totalorder %s391_s25, %s558_s5 }
 0x10f   :  { %p397_p7 = pnand %p395_p6, %p392_p5 }
 0x111   :  { %400 = shalt.err (!%p397_p7)
}
 0x112   :  { %320 = dma.vmem_to_hbm [thread:$0]  %s318_s20, 16, %s558_s5, [#allocation4]  }
 0x113   :  { %401 = dma.done.wait [#allocation4], 16  }
 0x114   :  { %402 = vsyncadd [#allocation4], 4294967280 }
 0x115   :  { %324 = vsyncpa [#allocation4], 1 }

</bundles_post_ra>
